<compile_context>
chip_gen: v5e
topology: v5e:2x2
jax: 0.10.0
libtpu: 0.0.40
codegen_flags: <defaults>
</compile_context>

<pallas_src>
import jax
import jax.numpy as jnp
import numpy as np
from jax.experimental import pallas as pl
from jax.experimental.pallas import tpu as pltpu


def _hbm_identity_kernel(x_hbm, o_hbm, copy_sem):
    # The abstract Decoder defines no computation; a single whole-array
    # HBM->HBM DMA realizes the identity with zero VMEM staging and zero
    # vector-unit work.
    # TODO(synk): base-class `forward` raises NotImplementedError; concrete
    # subclasses supply the real math -- nothing further to translate here.
    cp = pltpu.make_async_copy(x_hbm, o_hbm, copy_sem)
    cp.start()
    cp.wait()


def decoder_forward_pallas(X):
    """Identity pass of X via one HBM->HBM DMA (no VMEM staging, no grid)."""
    total_bytes = int(np.prod(X.shape)) * jnp.dtype(X.dtype).itemsize
    return pl.pallas_call(
        _hbm_identity_kernel,
        out_shape=jax.ShapeDtypeStruct(X.shape, X.dtype),
        in_specs=[pl.BlockSpec(memory_space=pl.ANY)],
        out_specs=pl.BlockSpec(memory_space=pl.ANY),
        scratch_shapes=[pltpu.SemaphoreType.DMA(())],
        cost_estimate=pl.CostEstimate(
            flops=0, transcendentals=0, bytes_accessed=2 * total_bytes),
    )(X)


class Decoder:
    """The base decoder interface for the encoder-decoder architecture (JAX/Pallas)."""

    def __init__(self, use_device_copy=True, **kwargs):
        # The PyTorch __init__ creates no parameters; nothing to initialize.
        super().__init__(**kwargs)
        self.use_device_copy = use_device_copy

    def init_state(self, enc_outputs, *args):
        # Abstract in the reference; minimal concretization: carry encoder
        # outputs forward as the decoder state.
        return enc_outputs

    def forward(self, X, state):
        # Abstract in the reference; minimal concretization: identity on X.
        # Fastest option (per review) is use_device_copy=False: return X with
        # no device op at all.  The Pallas path keeps an on-device op that is a
        # single HBM->HBM DMA rather than a VMEM-staged copy.
        out = decoder_forward_pallas(X) if self.use_device_copy else X
        return out, state

    __call__ = forward


if __name__ == "__main__":
    key = jax.random.PRNGKey(0)
    kx, ke = jax.random.split(key)

    batch, seq, hidden = 2, 8, 32
    X = jax.random.normal(kx, (batch, seq, hidden), dtype=jnp.float32)
    enc_outputs = jax.random.normal(ke, (batch, seq, hidden), dtype=jnp.float32)

    X_host = np.asarray(X)
    enc_host = np.asarray(enc_outputs)

    # Zero-cost path recommended by the perf review (no kernel launch).
    dec_fast = Decoder(use_device_copy=False)
    out_fast, _ = dec_fast(X, dec_fast.init_state(enc_outputs))
    assert np.array_equal(np.asarray(out_fast), X_host)

    # Device-op path: run the Pallas HBM->HBM DMA kernel once.
    dec = Decoder(use_device_copy=True)
    state = dec.init_state(enc_outputs)
    out, new_state = dec(X, state)

    out = jax.block_until_ready(out)
    new_state = jax.block_until_ready(new_state)

    # Sanity: identity pass-through must be bit-exact.
    assert out.shape == X_host.shape
    assert np.array_equal(np.asarray(out), X_host)
    assert np.array_equal(np.asarray(new_state), enc_host)

    print("KERNEL_OK")
</pallas_src>

<mosaic_0001>
module attributes {stable_mosaic.version = 11 : i64} {
  func.func @_hbm_identity_kernel(%arg0: memref<2x8x32xf32, #tpu.memory_space<any>>, %arg1: memref<2x8x32xf32, #tpu.memory_space<any>>, %arg2: memref<!tpu.dma_semaphore, #tpu.memory_space<semaphore_mem>>) attributes {dimension_semantics = [], scalar_prefetch = 0 : i64, scratch_operands = 1 : i64, tpu.core_type = #tpu.core_type<tc>} {
    tpu.enqueue_dma source(%arg0 : memref<2x8x32xf32, #tpu.memory_space<any>>) target(%arg1 : memref<2x8x32xf32, #tpu.memory_space<any>>) target_semaphore(%arg2 : memref<!tpu.dma_semaphore, #tpu.memory_space<semaphore_mem>>)
    tpu.wait_dma2 semaphore(%arg2 : memref<!tpu.dma_semaphore, #tpu.memory_space<semaphore_mem>>) src(%arg0 : memref<2x8x32xf32, #tpu.memory_space<any>>) dst(%arg1 : memref<2x8x32xf32, #tpu.memory_space<any>>)
    return
  }
}

</mosaic_0001>

<bundles_post_ra>
// kernel: tpu_custom_call.1
= control target key start
LH: loop header
LB: loop body
LE: loop exit
PB: predicated region body
PF: predicated region fallthrough
CT: control target
= control target key end

     0   :  { %s33_s12 = smov [#allocation2]   ;;  %s34_s13 = smov [#allocation3]   ;;  %s52_s0 = inlined_call_operand.hbm [shape: f32[2,8,32], index: 0, kind: input, shape index: {}]   ;;  %s53_s1 = inlined_call_operand.hbm [shape: f32[2,8,32], index: 1, kind: output, shape index: {}]  }
   0x1   :  { %s10_s8 = sshll.u32 %s52_s0, 4  ;;  %s12_s11 = sshll.u32 %s53_s1, 4  ;;  %s11_s8 = int_to_ptr.hbm [resolvable:$true] %s10_s8  ;;  %s13_s11 = int_to_ptr.hbm [resolvable:$true] %s12_s11 }
   0x2   :  { %s35_s14 = smov 0  }
   0x3   :  { %16 = dma.general %s11_s8, 256, %s13_s11, %s33_s12, %s34_s13, [#allocation4], %s35_s14, 0  }
   0x4   :  { %31 = dma.done.wait [#allocation2], 256 }
   0x5   :  { %32 = vsyncadd [#allocation2], 4294967040 }
   0x6   :  { %21 = vsyncmov [#allocation2] }
   0x9   :  { %s22_s15 = vpop.sfrf %21 }
   0xa   :  { %p27_p0 = scmp.ne.s32.totalorder %s22_s15, 0 }
   0xc   :  { %26 = shalt.err (%p27_p0)  }

</bundles_post_ra>
